<compile_context>
chip_gen: v6e
topology: v6e:2x2x1
jax: 0.10.0
libtpu: 0.0.40
codegen_flags: <defaults>
</compile_context>

<pallas_src>
import jax
import jax.numpy as jnp
from jax.experimental import pallas as pl
from jax.experimental.pallas import tpu as pltpu

NUM_HISTORY_TIMESTEPS = 10
NUM_LABEL_TIMESTEPS = 10
T_OUT = NUM_LABEL_TIMESTEPS

IN_FEATS = 3 * NUM_HISTORY_TIMESTEPS          # 30
IN_LANES = 32                                  # kernel input width (padded)
ENCODER_DIMS = [IN_FEATS, 32, 64, 128]
DECODER_DIMS = [128, 64, 32, 2 * T_OUT]
ALL_DIMS = ENCODER_DIMS + DECODER_DIMS[1:]     # 30,32,64,128,64,32,20

XSEG = 16                                      # x coords in lanes [0,10), y in [16,26)
OUT_LANES = 2 * XSEG                           # 32-wide kernel output
MAX_TM = 2048                                  # max row tile (VMEM use still ~1 MiB)
COMPUTE_DTYPE = jnp.bfloat16                   # matmul operand dtype (f32 accumulation)


# ----------------------------------------------------------------------------
# Pallas kernel: fused 6-layer MLP + actor->world transform
# ----------------------------------------------------------------------------
def _fused_mlp_kernel(x_ref, pose_ref,
                      w0, w1, w2, w3, w4, w5,
                      b_ref, o_ref):
    b = b_ref[...]                                              # (6, 128) f32

    def lin(h, w_ref, bias):
        # matmul operands in weight dtype (bf16), accumulate + bias in f32
        return jnp.dot(h.astype(w_ref.dtype), w_ref[...],
                       preferred_element_type=jnp.float32) + bias

    h = x_ref[...]                                              # (tm, 32)
    # encoder: Linear(30,32) ReLU Linear(32,64) ReLU Linear(64,128)
    h = jnp.maximum(lin(h, w0, b[0:1, :32]), 0.0)
    h = jnp.maximum(lin(h, w1, b[1:2, :64]), 0.0)
    h = lin(h, w2, b[2:3, :128])                # no ReLU here (matches torch)
    # decoder: Linear(128,64) ReLU Linear(64,32) ReLU Linear(32,20 -> 32 padded)
    h = jnp.maximum(lin(h, w3, b[3:4, :64]), 0.0)
    h = jnp.maximum(lin(h, w4, b[4:5, :32]), 0.0)
    h = lin(h, w5, b[5:6, :OUT_LANES])          # (tm, 32) actor-frame, de-interleaved

    # fused postprocess: actor frame -> world (SDV) frame
    pose = pose_ref[...]                                        # (tm, 4) f32
    c, s = pose[:, 0:1], pose[:, 1:2]
    tx, ty = pose[:, 2:3], pose[:, 3:4]
    px = h[:, :XSEG]                                            # x coords (+ zero pad)
    py = h[:, XSEG:]                                            # y coords (+ zero pad)
    wx = px * c - py * s + tx
    wy = px * s + py * c + ty
    o_ref[...] = jnp.concatenate([wx, wy], axis=-1)             # (tm, 32) f32


# ----------------------------------------------------------------------------
# Tiling: balanced blocks, >= 2 blocks for v7x megacore, 16-row granularity
# ----------------------------------------------------------------------------
def _round_up(x, m):
    return ((x + m - 1) // m) * m


def _choose_tiling(bn):
    if bn <= 64:
        return (_round_up(bn, 16) if bn > 8 else 8), 1
    n_blocks = max(pl.cdiv(bn, MAX_TM), 2)         # >= 2 keeps both v7x TCs busy
    tm = _round_up(pl.cdiv(bn, n_blocks), 16)      # 16 = bf16 sublane pack
    return tm, pl.cdiv(bn, tm)


def _const_spec(shape):
    """Grid-invariant input: single-buffered if pipeline_mode is available."""
    try:
        return pl.BlockSpec(shape, lambda i: (0, 0), pipeline_mode=pl.Buffered(1))
    except (TypeError, ValueError, AttributeError):
        return pl.BlockSpec(shape, lambda i: (0, 0))


def fused_forward(x_feats, pose_feats, weights, b_all):
    """x_feats [BN,32], pose_feats [BN,4] f32 -> [BN,32] f32 world-frame coords."""
    bn = x_feats.shape[0]
    tm, grid = _choose_tiling(bn)

    in_specs = [pl.BlockSpec((tm, IN_LANES), lambda i: (i, 0)),
                pl.BlockSpec((tm, 4), lambda i: (i, 0))]
    in_specs += [_const_spec(w.shape) for w in weights]
    in_specs += [_const_spec(b_all.shape)]

    return pl.pallas_call(
        _fused_mlp_kernel,
        out_shape=jax.ShapeDtypeStruct((bn, OUT_LANES), jnp.float32),
        grid=(grid,),
        in_specs=in_specs,
        out_specs=pl.BlockSpec((tm, OUT_LANES), lambda i: (i, 0)),
        compiler_params=pltpu.CompilerParams(
            dimension_semantics=("parallel",),
            vmem_limit_bytes=32 * 1024 * 1024),
    )(x_feats, pose_feats, *weights, b_all)


# ----------------------------------------------------------------------------
# One-time parameter packing (hoisted out of the per-call path)
# ----------------------------------------------------------------------------
def init_params(key):
    """Deterministic init matching the PyTorch Linear shapes (stored [in, out])."""
    params = []
    for i in range(len(ALL_DIMS) - 1):
        fan_in, fan_out = ALL_DIMS[i], ALL_DIMS[i + 1]
        key, kw, kb = jax.random.split(key, 3)
        bound = 1.0 / jnp.sqrt(fan_in)
        w = jax.random.uniform(kw, (fan_in, fan_out), jnp.float32, -bound, bound)
        b = jax.random.uniform(kb, (1, fan_out), jnp.float32, -bound, bound)
        params.append((w, b))
    return params


def prepare_params(params, compute_dtype=COMPUTE_DTYPE):
    """Pack once: cast weights, pad w0 rows 30->32, de-interleave + pad the final
    layer columns to [x0..x9, 0*6, y0..y9, 0*6], pack all biases into (6,128) f32."""
    weights = []
    b_all = jnp.zeros((len(params), 128), jnp.float32)
    n_layers = len(params)
    for li, (w, bvec) in enumerate(params):
        if li == 0:
            w = jnp.pad(w, ((0, IN_LANES - w.shape[0]), (0, 0)))
        if li == n_layers - 1:
            zw = jnp.zeros((w.shape[0], XSEG - T_OUT), w.dtype)
            zb = jnp.zeros((1, XSEG - T_OUT), bvec.dtype)
            w = jnp.concatenate([w[:, 0::2], zw, w[:, 1::2], zw], axis=1)
            bvec = jnp.concatenate([bvec[:, 0::2], zb, bvec[:, 1::2], zb], axis=1)
        weights.append(w.astype(compute_dtype))
        b_all = b_all.at[li, :bvec.shape[1]].set(bvec[0].astype(jnp.float32))
    return tuple(weights), b_all


# ----------------------------------------------------------------------------
# Pre/post-processing glue (plain JAX, fuses in XLA)
# ----------------------------------------------------------------------------
def preprocess(x):
    """x [B,N,T,5] -> (feats [BN,32] compute-dtype, pose_feats [BN,4] f32)."""
    b, n, t, _ = x.shape
    x = x.reshape(b * n, t, 5)
    pose = x[:, -1, :3]                                   # (BN,3) x,y,yaw at last step
    c = jnp.cos(pose[:, 2])[:, None]
    s = jnp.sin(pose[:, 2])[:, None]
    rel = x[..., :2] - pose[:, None, :2]
    px = rel[..., 0] * c + rel[..., 1] * s
    py = -rel[..., 0] * s + rel[..., 1] * c
    yaw = x[..., 2] - x[:, -1:, 2]
    feats = jnp.stack([px, py, yaw], axis=-1)             # (BN, T, 3)
    feats = jnp.where(jnp.isnan(feats), 0.0, feats)       # nan -> 0
    feats = feats.reshape(b * n, t * 3)
    feats = jnp.pad(feats, ((0, 0), (0, IN_LANES - feats.shape[1])))
    pose_feats = jnp.concatenate([c, s, pose[:, 0:1], pose[:, 1:2]], axis=1)
    return feats.astype(COMPUTE_DTYPE), pose_feats.astype(jnp.float32)


def postprocess(out_kernel, b, n):
    """out_kernel [BN,32] (x coords lanes 0..9, y coords lanes 16..25) -> [B,N,T,2]."""
    xs = out_kernel[:, :T_OUT]
    ys = out_kernel[:, XSEG:XSEG + T_OUT]
    return jnp.stack([xs, ys], axis=-1).reshape(b, n, T_OUT, 2)


@jax.jit
def prediction_model_forward(x, weights, b_all):
    b, n = x.shape[0], x.shape[1]
    feats, pose_feats = preprocess(x)
    out = fused_forward(feats, pose_feats, weights, b_all)
    return postprocess(out, b, n)


# ----------------------------------------------------------------------------
# Pure-JAX reference (original torch semantics, same matmul compute dtype)
# ----------------------------------------------------------------------------
def _reference_forward(x, params, compute_dtype=COMPUTE_DTYPE):
    b, n, t, _ = x.shape
    xf = x.reshape(b * n, t, 5)
    pose = xf[:, -1, :3]
    c = jnp.cos(pose[:, 2])[:, None]
    s = jnp.sin(pose[:, 2])[:, None]
    rel = xf[..., :2] - pose[:, None, :2]
    px = rel[..., 0] * c + rel[..., 1] * s
    py = -rel[..., 0] * s + rel[..., 1] * c
    yaw = xf[..., 2] - xf[:, -1:, 2]
    feats = jnp.stack([px, py, yaw], axis=-1)
    feats = jnp.where(jnp.isnan(feats), 0.0, feats)
    h = feats.reshape(b * n, t * 3)
    relu_after = [True, True, False, True, True, False]
    for (w, bias), r in zip(params, relu_after):
        h = jnp.dot(h.astype(compute_dtype), w.astype(compute_dtype),
                    preferred_element_type=jnp.float32) + bias
        if r:
            h = jnp.maximum(h, 0.0)
    out = h.reshape(b * n, T_OUT, 2)
    wx = out[..., 0] * c - out[..., 1] * s + pose[:, 0:1]
    wy = out[..., 0] * s + out[..., 1] * c + pose[:, 1:2]
    return jnp.stack([wx, wy], axis=-1).reshape(b, n, T_OUT, 2)


if __name__ == "__main__":
    key = jax.random.PRNGKey(0)
    kp, kx, kx2 = jax.random.split(key, 3)
    params = init_params(kp)
    weights, b_all = prepare_params(params)        # one-time packing (not per call)

    # --- small case: batch=2, N=4 actors, T=10 history steps, 5 features ----
    batch, num_actors = 2, 4
    x = jax.random.normal(kx, (batch, num_actors, NUM_HISTORY_TIMESTEPS, 5),
                          jnp.float32)
    # sprinkle a NaN to exercise the nan -> 0 path (not at the last timestep)
    x = x.at[0, 1, 3, 0].set(jnp.nan)

    out = jax.block_until_ready(prediction_model_forward(x, weights, b_all))
    ref = _reference_forward(x, params)
    assert out.shape == (batch, num_actors, NUM_LABEL_TIMESTEPS, 2)
    assert jnp.allclose(out, ref, atol=2e-3, rtol=2e-3), \
        float(jnp.max(jnp.abs(out - ref)))

    # --- larger case: BN=600 -> tm=304, grid=2 balanced blocks (608 rows) ---
    batch2, num_actors2 = 2, 300
    x2 = jax.random.normal(kx2, (batch2, num_actors2, NUM_HISTORY_TIMESTEPS, 5),
                           jnp.float32)
    out2 = jax.block_until_ready(prediction_model_forward(x2, weights, b_all))
    ref2 = _reference_forward(x2, params)
    assert out2.shape == (batch2, num_actors2, NUM_LABEL_TIMESTEPS, 2)
    assert jnp.allclose(out2, ref2, atol=2e-3, rtol=2e-3), \
        float(jnp.max(jnp.abs(out2 - ref2)))

    print("KERNEL_OK")
</pallas_src>

<mosaic_0001>
module attributes {stable_mosaic.version = 11 : i64} {
  func.func @_fused_mlp_kernel(%arg0: i32, %arg1: memref<8x32xbf16, #tpu.memory_space<vmem>>, %arg2: memref<8x4xf32, #tpu.memory_space<vmem>>, %arg3: memref<32x32xbf16, #tpu.memory_space<vmem>>, %arg4: memref<32x64xbf16, #tpu.memory_space<vmem>>, %arg5: memref<64x128xbf16, #tpu.memory_space<vmem>>, %arg6: memref<128x64xbf16, #tpu.memory_space<vmem>>, %arg7: memref<64x32xbf16, #tpu.memory_space<vmem>>, %arg8: memref<32x32xbf16, #tpu.memory_space<vmem>>, %arg9: memref<6x128xf32, #tpu.memory_space<vmem>>, %arg10: memref<8x32xf32, #tpu.memory_space<vmem>>) attributes {dimension_semantics = [#tpu.dimension_semantics<parallel>], iteration_bounds = array<i64: 1>, scalar_prefetch = 0 : i64, scratch_operands = 0 : i64, tpu.core_type = #tpu.core_type<tc>, window_params = [{transform_indices = @transform_0, window_bounds = array<i64: 8, 32>}, {transform_indices = @transform_1, window_bounds = array<i64: 8, 4>}, {pipeline_mode = #tpu.pipeline_mode<synchronous>, transform_indices = @transform_2, window_bounds = array<i64: 32, 32>}, {pipeline_mode = #tpu.pipeline_mode<synchronous>, transform_indices = @transform_3, window_bounds = array<i64: 32, 64>}, {pipeline_mode = #tpu.pipeline_mode<synchronous>, transform_indices = @transform_4, window_bounds = array<i64: 64, 128>}, {pipeline_mode = #tpu.pipeline_mode<synchronous>, transform_indices = @transform_5, window_bounds = array<i64: 128, 64>}, {pipeline_mode = #tpu.pipeline_mode<synchronous>, transform_indices = @transform_6, window_bounds = array<i64: 64, 32>}, {pipeline_mode = #tpu.pipeline_mode<synchronous>, transform_indices = @transform_7, window_bounds = array<i64: 32, 32>}, {pipeline_mode = #tpu.pipeline_mode<synchronous>, transform_indices = @transform_8, window_bounds = array<i64: 6, 128>}, {transform_indices = @transform_9, window_bounds = array<i64: 8, 32>}]} {
    %c0 = arith.constant 0 : index
    %c0_0 = arith.constant 0 : index
    %0 = vector.load %arg9[%c0, %c0_0] : memref<6x128xf32, #tpu.memory_space<vmem>>, vector<6x128xf32>
    %c0_1 = arith.constant 0 : index
    %c0_2 = arith.constant 0 : index
    %1 = vector.load %arg1[%c0_1, %c0_2] : memref<8x32xbf16, #tpu.memory_space<vmem>>, vector<8x32xbf16>
    %2 = vector.extract_strided_slice %0 {offsets = [0, 0], sizes = [1, 32], strides = [1, 1]} : vector<6x128xf32> to vector<1x32xf32>
    %c0_3 = arith.constant 0 : index
    %c0_4 = arith.constant 0 : index
    %3 = vector.load %arg3[%c0_3, %c0_4] : memref<32x32xbf16, #tpu.memory_space<vmem>>, vector<32x32xbf16>
    %cst = arith.constant dense<0.000000e+00> : vector<8x32xf32>
    %4 = tpu.matmul %1, %3, %cst {dimension_numbers = #tpu.dot_dimension_numbers<[1], [0], [0], [1], [0, 0, 1, 1], [], []>} : vector<8x32xbf16>, vector<32x32xbf16>, vector<8x32xf32> -> vector<8x32xf32>
    %5 = vector.broadcast %2 : vector<1x32xf32> to vector<8x32xf32>
    %6 = arith.addf %4, %5 : vector<8x32xf32>
    %cst_5 = arith.constant 0.000000e+00 : f32
    %7 = vector.broadcast %cst_5 : f32 to vector<8x32xf32>
    %8 = arith.maximumf %6, %7 : vector<8x32xf32>
    %9 = vector.extract_strided_slice %0 {offsets = [1, 0], sizes = [1, 64], strides = [1, 1]} : vector<6x128xf32> to vector<1x64xf32>
    %10 = arith.truncf %8 : vector<8x32xf32> to vector<8x32xbf16>
    %c0_6 = arith.constant 0 : index
    %c0_7 = arith.constant 0 : index
    %11 = vector.load %arg4[%c0_6, %c0_7] : memref<32x64xbf16, #tpu.memory_space<vmem>>, vector<32x64xbf16>
    %cst_8 = arith.constant dense<0.000000e+00> : vector<8x64xf32>
    %12 = tpu.matmul %10, %11, %cst_8 {dimension_numbers = #tpu.dot_dimension_numbers<[1], [0], [0], [1], [0, 0, 1, 1], [], []>} : vector<8x32xbf16>, vector<32x64xbf16>, vector<8x64xf32> -> vector<8x64xf32>
    %13 = vector.broadcast %9 : vector<1x64xf32> to vector<8x64xf32>
    %14 = arith.addf %12, %13 : vector<8x64xf32>
    %cst_9 = arith.constant 0.000000e+00 : f32
    %15 = vector.broadcast %cst_9 : f32 to vector<8x64xf32>
    %16 = arith.maximumf %14, %15 : vector<8x64xf32>
    %17 = vector.extract_strided_slice %0 {offsets = [2, 0], sizes = [1, 128], strides = [1, 1]} : vector<6x128xf32> to vector<1x128xf32>
    %18 = arith.truncf %16 : vector<8x64xf32> to vector<8x64xbf16>
    %c0_10 = arith.constant 0 : index
    %c0_11 = arith.constant 0 : index
    %19 = vector.load %arg5[%c0_10, %c0_11] : memref<64x128xbf16, #tpu.memory_space<vmem>>, vector<64x128xbf16>
    %cst_12 = arith.constant dense<0.000000e+00> : vector<8x128xf32>
    %20 = tpu.matmul %18, %19, %cst_12 {dimension_numbers = #tpu.dot_dimension_numbers<[1], [0], [0], [1], [0, 0, 1, 1], [], []>} : vector<8x64xbf16>, vector<64x128xbf16>, vector<8x128xf32> -> vector<8x128xf32>
    %21 = vector.broadcast %17 : vector<1x128xf32> to vector<8x128xf32>
    %22 = arith.addf %20, %21 : vector<8x128xf32>
    %23 = vector.extract_strided_slice %0 {offsets = [3, 0], sizes = [1, 64], strides = [1, 1]} : vector<6x128xf32> to vector<1x64xf32>
    %24 = arith.truncf %22 : vector<8x128xf32> to vector<8x128xbf16>
    %c0_13 = arith.constant 0 : index
    %c0_14 = arith.constant 0 : index
    %25 = vector.load %arg6[%c0_13, %c0_14] : memref<128x64xbf16, #tpu.memory_space<vmem>>, vector<128x64xbf16>
    %cst_15 = arith.constant dense<0.000000e+00> : vector<8x64xf32>
    %26 = tpu.matmul %24, %25, %cst_15 {dimension_numbers = #tpu.dot_dimension_numbers<[1], [0], [0], [1], [0, 0, 1, 1], [], []>} : vector<8x128xbf16>, vector<128x64xbf16>, vector<8x64xf32> -> vector<8x64xf32>
    %27 = vector.broadcast %23 : vector<1x64xf32> to vector<8x64xf32>
    %28 = arith.addf %26, %27 : vector<8x64xf32>
    %cst_16 = arith.constant 0.000000e+00 : f32
    %29 = vector.broadcast %cst_16 : f32 to vector<8x64xf32>
    %30 = arith.maximumf %28, %29 : vector<8x64xf32>
    %31 = vector.extract_strided_slice %0 {offsets = [4, 0], sizes = [1, 32], strides = [1, 1]} : vector<6x128xf32> to vector<1x32xf32>
    %32 = arith.truncf %30 : vector<8x64xf32> to vector<8x64xbf16>
    %c0_17 = arith.constant 0 : index
    %c0_18 = arith.constant 0 : index
    %33 = vector.load %arg7[%c0_17, %c0_18] : memref<64x32xbf16, #tpu.memory_space<vmem>>, vector<64x32xbf16>
    %cst_19 = arith.constant dense<0.000000e+00> : vector<8x32xf32>
    %34 = tpu.matmul %32, %33, %cst_19 {dimension_numbers = #tpu.dot_dimension_numbers<[1], [0], [0], [1], [0, 0, 1, 1], [], []>} : vector<8x64xbf16>, vector<64x32xbf16>, vector<8x32xf32> -> vector<8x32xf32>
    %35 = vector.broadcast %31 : vector<1x32xf32> to vector<8x32xf32>
    %36 = arith.addf %34, %35 : vector<8x32xf32>
    %cst_20 = arith.constant 0.000000e+00 : f32
    %37 = vector.broadcast %cst_20 : f32 to vector<8x32xf32>
    %38 = arith.maximumf %36, %37 : vector<8x32xf32>
    %39 = vector.extract_strided_slice %0 {offsets = [5, 0], sizes = [1, 32], strides = [1, 1]} : vector<6x128xf32> to vector<1x32xf32>
    %40 = arith.truncf %38 : vector<8x32xf32> to vector<8x32xbf16>
    %c0_21 = arith.constant 0 : index
    %c0_22 = arith.constant 0 : index
    %41 = vector.load %arg8[%c0_21, %c0_22] : memref<32x32xbf16, #tpu.memory_space<vmem>>, vector<32x32xbf16>
    %cst_23 = arith.constant dense<0.000000e+00> : vector<8x32xf32>
    %42 = tpu.matmul %40, %41, %cst_23 {dimension_numbers = #tpu.dot_dimension_numbers<[1], [0], [0], [1], [0, 0, 1, 1], [], []>} : vector<8x32xbf16>, vector<32x32xbf16>, vector<8x32xf32> -> vector<8x32xf32>
    %43 = vector.broadcast %39 : vector<1x32xf32> to vector<8x32xf32>
    %44 = arith.addf %42, %43 : vector<8x32xf32>
    %c0_24 = arith.constant 0 : index
    %c0_25 = arith.constant 0 : index
    %45 = vector.load %arg2[%c0_24, %c0_25] : memref<8x4xf32, #tpu.memory_space<vmem>>, vector<8x4xf32>
    %46 = vector.extract_strided_slice %45 {offsets = [0, 0], sizes = [8, 1], strides = [1, 1]} : vector<8x4xf32> to vector<8x1xf32>
    %47 = vector.extract_strided_slice %45 {offsets = [0, 1], sizes = [8, 1], strides = [1, 1]} : vector<8x4xf32> to vector<8x1xf32>
    %48 = vector.extract_strided_slice %45 {offsets = [0, 2], sizes = [8, 1], strides = [1, 1]} : vector<8x4xf32> to vector<8x1xf32>
    %49 = vector.extract_strided_slice %45 {offsets = [0, 3], sizes = [8, 1], strides = [1, 1]} : vector<8x4xf32> to vector<8x1xf32>
    %50 = vector.extract_strided_slice %44 {offsets = [0, 0], sizes = [8, 16], strides = [1, 1]} : vector<8x32xf32> to vector<8x16xf32>
    %51 = vector.extract_strided_slice %44 {offsets = [0, 16], sizes = [8, 16], strides = [1, 1]} : vector<8x32xf32> to vector<8x16xf32>
    %52 = vector.broadcast %46 : vector<8x1xf32> to vector<8x16xf32>
    %53 = arith.mulf %50, %52 : vector<8x16xf32>
    %54 = vector.broadcast %47 : vector<8x1xf32> to vector<8x16xf32>
    %55 = arith.mulf %51, %54 : vector<8x16xf32>
    %56 = arith.subf %53, %55 : vector<8x16xf32>
    %57 = vector.broadcast %48 : vector<8x1xf32> to vector<8x16xf32>
    %58 = arith.addf %56, %57 : vector<8x16xf32>
    %59 = vector.broadcast %47 : vector<8x1xf32> to vector<8x16xf32>
    %60 = arith.mulf %50, %59 : vector<8x16xf32>
    %61 = vector.broadcast %46 : vector<8x1xf32> to vector<8x16xf32>
    %62 = arith.mulf %51, %61 : vector<8x16xf32>
    %63 = arith.addf %60, %62 : vector<8x16xf32>
    %64 = vector.broadcast %49 : vector<8x1xf32> to vector<8x16xf32>
    %65 = arith.addf %63, %64 : vector<8x16xf32>
    %66 = tpu.concatenate %58, %65 in 1 : vector<8x16xf32>, vector<8x16xf32> -> vector<8x32xf32>
    %c0_26 = arith.constant 0 : index
    %c0_27 = arith.constant 0 : index
    %67 = vector.load %arg10[%c0_26, %c0_27] : memref<8x32xf32, #tpu.memory_space<vmem>>, vector<8x32xf32>
    tpu.vector_store %arg10[%c0_26, %c0_27], %66 {strides = array<i32>} : memref<8x32xf32, #tpu.memory_space<vmem>>, vector<8x32xf32>,
    return
  }
  func.func @transform_0(%arg0: i32) -> (i32, i32) {
    %c0_i32 = arith.constant 0 : i32
    %c0_i32_0 = arith.constant 0 : i32
    return %arg0, %c0_i32 : i32, i32
  }
  func.func @transform_1(%arg0: i32) -> (i32, i32) {
    %c0_i32 = arith.constant 0 : i32
    %c0_i32_0 = arith.constant 0 : i32
    return %arg0, %c0_i32 : i32, i32
  }
  func.func @transform_2(%arg0: i32) -> (i32, i32) {
    %c0_i32 = arith.constant 0 : i32
    %c0_i32_0 = arith.constant 0 : i32
    %c0_i32_1 = arith.constant 0 : i32
    return %c0_i32, %c0_i32_0 : i32, i32
  }
  func.func @transform_3(%arg0: i32) -> (i32, i32) {
    %c0_i32 = arith.constant 0 : i32
    %c0_i32_0 = arith.constant 0 : i32
    %c0_i32_1 = arith.constant 0 : i32
    return %c0_i32, %c0_i32_0 : i32, i32
  }
  func.func @transform_4(%arg0: i32) -> (i32, i32) {
    %c0_i32 = arith.constant 0 : i32
    %c0_i32_0 = arith.constant 0 : i32
    %c0_i32_1 = arith.constant 0 : i32
    return %c0_i32, %c0_i32_0 : i32, i32
  }
  func.func @transform_5(%arg0: i32) -> (i32, i32) {
    %c0_i32 = arith.constant 0 : i32
    %c0_i32_0 = arith.constant 0 : i32
    %c0_i32_1 = arith.constant 0 : i32
    return %c0_i32, %c0_i32_0 : i32, i32
  }
  func.func @transform_6(%arg0: i32) -> (i32, i32) {
    %c0_i32 = arith.constant 0 : i32
    %c0_i32_0 = arith.constant 0 : i32
    %c0_i32_1 = arith.constant 0 : i32
    return %c0_i32, %c0_i32_0 : i32, i32
  }
  func.func @transform_7(%arg0: i32) -> (i32, i32) {
    %c0_i32 = arith.constant 0 : i32
    %c0_i32_0 = arith.constant 0 : i32
    %c0_i32_1 = arith.constant 0 : i32
    return %c0_i32, %c0_i32_0 : i32, i32
  }
  func.func @transform_8(%arg0: i32) -> (i32, i32) {
    %c0_i32 = arith.constant 0 : i32
    %c0_i32_0 = arith.constant 0 : i32
    %c0_i32_1 = arith.constant 0 : i32
    return %c0_i32, %c0_i32_0 : i32, i32
  }
  func.func @transform_9(%arg0: i32) -> (i32, i32) {
    %c0_i32 = arith.constant 0 : i32
    %c0_i32_0 = arith.constant 0 : i32
    return %arg0, %c0_i32 : i32, i32
  }
}

</mosaic_0001>

<bundles_post_ra>
// kernel: prediction_model_forward.1
= control target key start
LH: loop header
LB: loop body
LE: loop exit
PB: predicated region body
PF: predicated region fallthrough
CT: control target
= control target key end

     0   :  { %v702_v0 = vmov 0.0   ;;  %vm703_vm0 = vmmov 0   ;;  %vm55_vm1 = vcmask 261120   ;;  %v39_v8 = vlaneseq  ;;  %s894_s2 = inlined_call_operand.vmem [shape: bf16[32,32], index: 2, kind: input, shape index: {}]   ;;  %s895_s0 = inlined_call_operand.vmem [shape: bf16[8,32], index: 0, kind: input, shape index: {}]   ;;  %s896_s3 = inlined_call_operand.vmem [shape: bf16[32,64], index: 3, kind: input, shape index: {}]   ;;  %s897_s4 = inlined_call_operand.vmem [shape: bf16[64,128], index: 4, kind: input, shape index: {}]   ;;  %s898_s8 = inlined_call_operand.vmem [shape: f32[6,128], index: 8, kind: input, shape index: {}]   ;;  %s899_s5 = inlined_call_operand.vmem [shape: bf16[128,64], index: 5, kind: input, shape index: {}]   ;;  %s900_s6 = inlined_call_operand.vmem [shape: bf16[64,32], index: 6, kind: input, shape index: {}]   ;;  %s901_s7 = inlined_call_operand.vmem [shape: bf16[32,32], index: 7, kind: input, shape index: {}]   ;;  %s902_s1 = inlined_call_operand.vmem [shape: f32[8,4], index: 1, kind: input, shape index: {}]   ;;  %s903_s9 = inlined_call_operand.vmem [shape: f32[8,32], index: 9, kind: output, shape index: {}]  }
   0x1   :  { %599 = vmatprep.subr.bf16.mxu0 %v702_v0  ;;  %v680_v1 = vld [vmem:[%s894_s2 + $0x8] sm:$0xff]   ;;  %603 = vmatprep.mubr.msk.bf16.mxu0 %vm703_vm0, %v702_v0  ;;  %v681_v2 = vld [vmem:[%s894_s2] sm:$0xff]   ;;  %v684_v6 = vld [vmem:[%s897_s4 + $0x18] sm:$0xff]   ;;  %vm202_vm2 = vcmask 523264   ;;  %v704_v62 = vmov 0   ;;  %vm537_vm3 = vcmask 130048  }
   0x2   :  { %607 = vmatprep.subr.bf16.mxu1 %v702_v0  ;;  %611 = vmatprep.mubr.msk.bf16.mxu1 %vm703_vm0, %v702_v0  ;;  %v34_v3 = vld [vmem:[%s895_s0] sm:$0xf]  ;;  %v682_v4 = vld [vmem:[%s896_s3 + $0x8] sm:$0xff]   ;;  %v685_v7 = vld [vmem:[%s897_s4 + $0x10] sm:$0xff]   ;;  %v796_v9 = vshrl.u32 %v39_v8, 7 }
   0x3   :  { %600 = vmatpush3.bf16.msra.mxu0 %v680_v1  ;;  %608 = vmatpush3.bf16.msra.mxu1 %v682_v4  ;;  %v683_v5 = vld [vmem:[%s896_s3] sm:$0xff]   ;;  %v686_v20 = vld [vmem:[%s897_s4 + $0x8] sm:$0xff]   ;;  %v688_v22 = vld [vmem:[%s899_s5 + $0x38] sm:$0xff]   ;;  %v705_v1 = vmov 3  }
   0x4   :  { %601 = vmatprep.subr.bf16.mxu0 %v702_v0  ;;  %609 = vmatprep.subr.bf16.mxu1 %v702_v0  ;;  %v41_v10 = vsub.s32 0, %v796_v9  ;;  %v802_v11 = vld [vmem:[%s898_s8] sm:$0x3f]  ;;  %v689_v23 = vld [vmem:[%s899_s5 + $0x30] sm:$0xff]   ;;  %v690_v24 = vld [vmem:[%s899_s5 + $0x28] sm:$0xff]   ;;  %v107_v29 = vsub.s32 1, %v796_v9 }
   0x5   :  { %v687_v21 = vld [vmem:[%s897_s4] sm:$0xff]   ;;  %v692_v26 = vld [vmem:[%s899_s5 + $0x18] sm:$0xff]   ;;  %v693_v27 = vld [vmem:[%s899_s5 + $0x10] sm:$0xff]   ;;  %v176_v41 = vsub.s32 2, %v796_v9  ;;  %v265_v51 = vsub.s32 3, %v796_v9  ;;  %675 = vset.pattern.permute.xlu0 %v704_v62  ;;  %677 = vset.pattern.permute.xlu1 %v705_v1 }
   0x6   :  { %v42_v12 = vrot.slane %v802_v11, %v41_v10  ;;  %v691_v25 = vld [vmem:[%s899_s5 + $0x20] sm:$0xff]   ;;  %v694_v28 = vld [vmem:[%s899_s5 + $0x8] sm:$0xff]   ;;  %v108_v30 = vrot.slane %v802_v11, %v107_v29  ;;  %v696_v39 = vld [vmem:[%s900_s6 + $0x18] sm:$0xff]  }
   0x7   :  { %602 = vmatpush3.bf16.msra.mxu0 %v681_v2  ;;  %610 = vmatpush3.bf16.msra.mxu1 %v683_v5  ;;  %v695_v38 = vld [vmem:[%s899_s5] sm:$0xff]   ;;  %v697_v40 = vld [vmem:[%s900_s6 + $0x10] sm:$0xff]   ;;  %v177_v42 = vrot.slane %v802_v11, %v176_v41  ;;  %v698_v49 = vld [vmem:[%s900_s6 + $0x8] sm:$0xff]   ;;  %v266_v52 = vrot.slane %v802_v11, %v265_v51  ;;  %v706_v2 = vmov 1  }
   0x8   :  { %615 = vmatprep.subr.bf16.mxu0 %v702_v0  ;;  %627 = vmatprep.subr.bf16.mxu1 %v702_v0  ;;  %v699_v50 = vld [vmem:[%s900_s6] sm:$0xff]   ;;  %v700_v58 = vld [vmem:[%s901_s7 + $0x8] sm:$0xff]  }
   0x9   :  { %v701_v61 = vld [vmem:[%s901_s7] sm:$0xff]   ;;  %s709_s7 = smov 16  }
   0xa   :  { %604 = vmatmul.mubr.msk.bf16.vlgmr.msra.gmra.mxu0 %vm55_vm1, %v34_v3  ;;  %v501_v63 = vld [vmem:[%s902_s1] sm:$0xff]  ;;  %s708_s1 = smov 112  }
   0xb   :  { %623 = vmatprep.mubr.msk.bf16.mxu0 %vm703_vm0, %v702_v0  ;;  %616 = vmatpush3.bf16.msra.mxu0 %v684_v6 }
   0xc   :  { %617 = vmatprep.subr.bf16.mxu0 %v702_v0  ;;  %504 = vperm.xlu0 %675, %v501_v63  }
   0xd   :  { %529 = vperm.xlu1 %677, %v501_v63  }
   0xf   :  { %618 = vmatpush3.bf16.msra.mxu0 %v685_v7 }
  0x10   :  { %619 = vmatprep.subr.bf16.mxu0 %v702_v0  ;;  %676 = vset.pattern.permute.xlu0 %v706_v2 }
  0x11   :  { %509 = vperm.xlu0 %676, %v501_v63  }
  0x13   :  { %620 = vmatpush3.bf16.msra.mxu0 %v686_v20 }
  0x14   :  { %621 = vmatprep.subr.bf16.mxu0 %v702_v0 }
  0x15   :  { %679 = vset.pattern.permute.xlu0 %v705_v1 }
  0x17   :  { %622 = vmatpush3.bf16.msra.mxu0 %v687_v21 }
  0x18   :  { %647 = vmatprep.subr.bf16.mxu0 %v702_v0 }
  0xca   :  { %v93_v13 = vpop.f32.mrf.mxu0 }
  0xcb   :  { %v94_v14 = vadd.f32 %v93_v13, %v42_v12  ;;  %v707_v13 = vmov 2  }
  0xcc   :  { %v605_v15 = vpop.f32.mrf.mxu0  ;;  %678 = vset.pattern.permute.xlu1 %v707_v13 }
  0xcd   :  { %v99_v16 = vmax.f32 %v94_v14, 0.0  ;;  %v444_v14 = vsub.s32 5, %v796_v9  ;;  %v505_v15 = vpop.permute.xlu0 %504 }
  0xce   :  { %v96_v17 = vpop.f32.mrf.mxu0 }
  0xcf   :  { %v100_v18 = vpack.c.bf16 %v99_v16, %v99_v16  ;;  %v445_v16 = vrot.slane %v802_v11, %v444_v14 }
  0xd0   :  { %v606_v19 = vpop.f32.mrf.mxu0 }
  0xd1   :  { %612 = vmatmul.mubr.msk.bf16.vlgmr.msra.gmra.mxu1 %vm55_vm1, %v100_v18  ;;  %v510_v18 = vpop.permute.xlu0 %509 }
  0xd2   :  { %643 = vmatprep.mubr.msk.bf16.mxu1 %vm703_vm0, %v702_v0  ;;  %628 = vmatpush3.bf16.msra.mxu1 %v688_v22 }
  0xd3   :  { %629 = vmatprep.subr.bf16.mxu1 %v702_v0 }
  0xd6   :  { %630 = vmatpush3.bf16.msra.mxu1 %v689_v23 }
  0xd7   :  { %631 = vmatprep.subr.bf16.mxu1 %v702_v0 }
  0xda   :  { %632 = vmatpush3.bf16.msra.mxu1 %v690_v24 }
  0xdb   :  { %633 = vmatprep.subr.bf16.mxu1 %v702_v0 }
  0xde   :  { %634 = vmatpush3.bf16.msra.mxu1 %v691_v25  ;;  %v530_v25 = vpop.permute.xlu1 %529 }
  0xdf   :  { %635 = vmatprep.subr.bf16.mxu1 %v702_v0 }
  0xe2   :  { %636 = vmatpush3.bf16.msra.mxu1 %v692_v26 }
  0xe3   :  { %637 = vmatprep.subr.bf16.mxu1 %v702_v0 }
  0xe6   :  { %638 = vmatpush3.bf16.msra.mxu1 %v693_v27 }
  0xe7   :  { %639 = vmatprep.subr.bf16.mxu1 %v702_v0 }
  0xea   :  { %640 = vmatpush3.bf16.msra.mxu1 %v694_v28 }
  0xeb   :  { %641 = vmatprep.subr.bf16.mxu1 %v702_v0 }
  0xee   :  { %642 = vmatpush3.bf16.msra.mxu1 %v695_v38 }
 0x191   :  { %v158_v31 = vpop.f32.mrf.mxu1 }
 0x192   :  { %v159_v32 = vadd.f32 %v158_v31, %v108_v30 }
 0x193   :  { %v613_v33 = vpop.f32.mrf.mxu1 }
 0x194   :  { %v164_v34 = vmax.f32 %v159_v32, 0.0 }
 0x195   :  { %v161_v35 = vpop.f32.mrf.mxu1 }
 0x196   :  { %v165_v36 = vpack.c.bf16 %v164_v34, %v164_v34 }
 0x197   :  { %v614_v37 = vpop.f32.mrf.mxu1 }
 0x198   :  { %624 = vmatmul.mubr.msk.bf16.vlgmr.msra.gmra.mxu0 %vm202_vm2, %v165_v36 }
 0x199   :  { %655 = vmatprep.mubr.msk.bf16.mxu0 %vm703_vm0, %v702_v0  ;;  %648 = vmatpush3.bf16.msra.mxu0 %v696_v39 }
 0x19a   :  { %649 = vmatprep.subr.bf16.mxu0 %v702_v0 }
 0x19d   :  { %650 = vmatpush3.bf16.msra.mxu0 %v697_v40 }
 0x19e   :  { %651 = vmatprep.subr.bf16.mxu0 %v702_v0 }
 0x1a1   :  { %652 = vmatpush3.bf16.msra.mxu0 %v698_v49 }
 0x1a2   :  { %653 = vmatprep.subr.bf16.mxu0 %v702_v0 }
 0x1a5   :  { %654 = vmatpush3.bf16.msra.mxu0 %v699_v50 }
 0x1a6   :  { %659 = vmatprep.subr.bf16.mxu0 %v702_v0 }
 0x258   :  { %v240_v43 = vpop.f32.mrf.mxu0 }
 0x259   :  { %v241_v44 = vadd.f32 %v240_v43, %v177_v42 }
 0x25a   :  { %v625_v45 = vpop.f32.mrf.mxu0 }
 0x25b   :  { %v246_v46 = vpack.c.bf16 %v241_v44, %v241_v44 }
 0x25c   :  { %v243_v47 = vpop.f32.mrf.mxu0 }
 0x25d   :  { %644 = vmatmul.mubr.bf16.vlgmr.msra.gmra.mxu1 %v246_v46 }
 0x25e   :  { %v626_v48 = vpop.f32.mrf.mxu0 }
 0x31d   :  { %v349_v53 = vpop.f32.mrf.mxu1 }
 0x31e   :  { %v350_v54 = vadd.f32 %v349_v53, %v266_v52 }
 0x31f   :  { %v645_v55 = vpop.f32.mrf.mxu1 }
 0x320   :  { %v355_v56 = vmax.f32 %v350_v54, 0.0 }
 0x321   :  { %v352_v57 = vpop.f32.mrf.mxu1 }
 0x322   :  { %v356_v59 = vpack.c.bf16 %v355_v56, %v355_v56 }
 0x323   :  { %v646_v60 = vpop.f32.mrf.mxu1 }
 0x324   :  { %656 = vmatmul.mubr.msk.bf16.vlgmr.msra.gmra.mxu0 %vm202_vm2, %v356_v59 }
 0x325   :  { %660 = vmatpush3.bf16.msra.mxu0 %v700_v58  ;;  %663 = vmatprep.mubr.msk.bf16.mxu0 %vm703_vm0, %v702_v0 }
 0x326   :  { %661 = vmatprep.subr.bf16.mxu0 %v702_v0  ;;  %v367_v0 = vsub.s32 4, %v796_v9 }
 0x328   :  { %v368_v3 = vrot.slane %v802_v11, %v367_v0 }
 0x329   :  { %662 = vmatpush3.bf16.msra.mxu0 %v701_v61 }
 0x3e4   :  { %v430_v4 = vpop.f32.mrf.mxu0 }
 0x3e5   :  { %v431_v5 = vadd.f32 %v430_v4, %v368_v3 }
 0x3e6   :  { %v657_v6 = vpop.f32.mrf.mxu0 }
 0x3e7   :  { %v436_v7 = vmax.f32 %v431_v5, 0.0 }
 0x3e8   :  { %v433_v8 = vpop.f32.mrf.mxu0 }
 0x3e9   :  { %v437_v10 = vpack.c.bf16 %v436_v7, %v436_v7 }
 0x3ea   :  { %v658_v12 = vpop.f32.mrf.mxu0 }
 0x3eb   :  { %664 = vmatmul.mubr.msk.bf16.vlgmr.msra.gmra.mxu0 %vm55_vm1, %v437_v10 }
 0x4ab   :  { %v495_v17 = vpop.f32.mrf.mxu0 }
 0x4ac   :  { %v496_v19 = vadd.f32 %v495_v17, %v445_v16 }
 0x4ad   :  { %v665_v20 = vpop.f32.mrf.mxu0 }
 0x4ae   :  { %v507_v21 = vmul.f32 %v505_v15, %v496_v19  ;;  %v512_v22 = vmul.f32 %v510_v18, %v496_v19 }
 0x4af   :  { %v498_v23 = vpop.f32.mrf.mxu0 }
 0x4b0   :  { %514 = vrot.lane.b32.xlu0 %v512_v22, %s708_s1  ;;  %524 = vrot.lane.b32.xlu1 %v507_v21, %s708_s1 }
 0x4b1   :  { %v666_v24 = vpop.f32.mrf.mxu0 }
 0x4b4   :  { %519 = vperm.xlu1 %678, %v501_v63  }
 0x522   :  { %v525_v26 = vpop.permute.xlu1 %524  ;;  %v515_v9 = vpop.permute.xlu0 %514 }
 0x523   :  { %v527_v27 = vadd.f32 %v525_v26, %v512_v22  ;;  %v517_v29 = vsub.f32 %v507_v21, %v515_v9 }
 0x525   :  { %v532_v28 = vadd.f32 %v530_v25, %v527_v27 }
 0x527   :  { %534 = vrot.lane.b32.xlu1 %v532_v28, %s709_s7 }
 0x52f   :  { %v520_v11 = vpop.permute.xlu1 %519 }
 0x530   :  { %v522_v30 = vadd.f32 %v520_v11, %v517_v29 }
 0x599   :  { %v535_v31 = vpop.permute.xlu1 %534 }
 0x59a   :  { %v538_v32 = vsel %vm537_vm3, %v522_v30, %v535_v31 }
 0x59b   :  { %539 = vst.msk [vmem:[%s903_s9] sm:$0xff] %vm55_vm1, %v538_v32 }

</bundles_post_ra>
